<compile_context>
chip_gen: v7x
topology: tpu7x:2x2x1
jax: 0.10.0
libtpu: 0.0.40
codegen_flags: <defaults>
</compile_context>

<pallas_src>
import jax
import jax.numpy as jnp
from jax.experimental import pallas as pl
from jax.experimental.pallas import tpu as pltpu


# ---------------------------------------------------------------------------
# Helpers
# ---------------------------------------------------------------------------
def _round_up(x: int, m: int) -> int:
    return ((x + m - 1) // m) * m


def _bilinear_weight_matrix(in_size: int, out_size: int) -> jax.Array:
    """Returns W of shape (out_size, in_size): out = W @ in (align_corners=False)."""
    scale = in_size / out_size
    out_idx = jnp.arange(out_size, dtype=jnp.float32)
    src = (out_idx + 0.5) * scale - 0.5
    src = jnp.maximum(src, 0.0)
    i0f = jnp.floor(src)
    frac = src - i0f
    i0 = jnp.clip(i0f.astype(jnp.int32), 0, in_size - 1)
    i1 = jnp.clip(i0 + 1, 0, in_size - 1)
    cols = jnp.arange(in_size, dtype=jnp.int32)[None, :]
    w = ((cols == i0[:, None]).astype(jnp.float32) * (1.0 - frac)[:, None]
         + (cols == i1[:, None]).astype(jnp.float32) * frac[:, None])
    return w  # (out_size, in_size), rows sum to 1


# ---------------------------------------------------------------------------
# Kernel
# ---------------------------------------------------------------------------
def _resize_kernel(wy_ref, wxt_ref, x_ref, o_ref):
    # wy_ref : (block_nh, H)                  compute dtype (f32 / bf16)
    # wxt_ref: (W, new_w_pad)                 compute dtype, lane dim padded to 128
    # x_ref  : (block_c, H, W)                input dtype
    # o_ref  : (block_c, block_nh, new_w_pad) output dtype
    block_c, H, W = x_ref.shape
    new_w_pad = wxt_ref.shape[1]
    wxt = wxt_ref[...]
    wy = wy_ref[...]

    # W-contraction fused across the whole channel block: one tall MXU matmul.
    x = x_ref[...].astype(wxt.dtype)                  # single cast for the block
    x_flat = x.reshape(block_c * H, W)                # last dim unchanged -> free
    tmp = jnp.dot(x_flat, wxt, preferred_element_type=jnp.float32)  # (block_c*H, new_w_pad)
    tmp = tmp.astype(wy.dtype).reshape(block_c, H, new_w_pad)

    # H-contraction (Wy) per channel; each store is lane-dense (new_w_pad % 128 == 0).
    for c in range(block_c):
        out_c = jnp.dot(wy, tmp[c], preferred_element_type=jnp.float32)  # (block_nh, new_w_pad)
        o_ref[c] = out_c.astype(o_ref.dtype)


# ---------------------------------------------------------------------------
# Wrappers
# ---------------------------------------------------------------------------
def resize_bilinear(image: jax.Array, new_h: int, new_w: int) -> jax.Array:
    """Bilinear resize of a CHW image via a Pallas TPU kernel."""
    C, H, W = image.shape
    new_h, new_w = int(new_h), int(new_w)
    compute_dtype = jnp.bfloat16 if image.dtype == jnp.bfloat16 else jnp.float32

    # Interpolation matrices, hoisted out of the kernel.
    wy = _bilinear_weight_matrix(H, new_h).astype(compute_dtype)   # (new_h, H)
    wxt = _bilinear_weight_matrix(W, new_w).T                      # (W, new_w) f32
    new_w_pad = _round_up(new_w, 128)
    if new_w_pad != new_w:
        # Zero weight columns -> output lane dim is a multiple of 128 (unmasked stores).
        wxt = jnp.pad(wxt, ((0, 0), (0, new_w_pad - new_w)))
    wxt = wxt.astype(compute_dtype)

    # ---- VMEM-aware block sizing (weights + f32 temporaries included). ----
    try:
        vmem_cap = int(getattr(pltpu.get_tpu_info(), "vmem_capacity_bytes",
                               64 * 1024 * 1024))
    except Exception:
        vmem_cap = 64 * 1024 * 1024                      # conservative (v7x per-TC)
    vmem_limit = int(min(vmem_cap * 3 // 4, 96 * 1024 * 1024))
    budget = int(vmem_limit * 0.75)

    in_bytes = jnp.dtype(image.dtype).itemsize
    w_bytes = jnp.dtype(compute_dtype).itemsize

    def step_bytes(bc, bnh):
        x_blk = bc * H * W * in_bytes
        o_blk = bc * bnh * new_w_pad * in_bytes
        wy_blk = bnh * H * w_bytes
        wxt_blk = W * new_w_pad * w_bytes
        temps = bc * H * W * 4 + bc * H * new_w_pad * 4 + bnh * new_w_pad * 4
        return 2 * (x_blk + o_blk + wy_blk + wxt_blk) + temps

    block_nh = new_h
    block_c = max(1, min(C, 16))          # cap the static per-channel unroll
    while block_c > 1 and step_bytes(block_c, block_nh) > budget:
        block_c -= 1
    while block_nh > 8 and step_bytes(block_c, block_nh) > budget:
        block_nh = max(8, _round_up((block_nh + 1) // 2, 8))
    # TODO(synk): if a single channel at block_nh=8 still exceeds the budget
    # (extreme frame sizes), the W-contraction itself would need K-tiling.

    n_cb = pl.cdiv(C, block_c)
    n_hb = pl.cdiv(new_h, block_nh)
    # Give both v7x TensorCores work when the grid would otherwise collapse to 1 step.
    if n_cb * n_hb < 2 and new_h >= 16:
        block_nh = max(8, _round_up((new_h + 1) // 2, 8))
        n_hb = pl.cdiv(new_h, block_nh)

    out = pl.pallas_call(
        _resize_kernel,
        out_shape=jax.ShapeDtypeStruct((C, new_h, new_w_pad), image.dtype),
        grid=(n_cb, n_hb),
        in_specs=[
            pl.BlockSpec((block_nh, H), lambda ci, hi: (hi, 0)),        # Wy row tile
            pl.BlockSpec((W, new_w_pad), lambda ci, hi: (0, 0)),        # Wx^T, resident
            pl.BlockSpec((block_c, H, W), lambda ci, hi: (ci, 0, 0)),   # image block
        ],
        out_specs=pl.BlockSpec((block_c, block_nh, new_w_pad),
                               lambda ci, hi: (ci, hi, 0)),
        compiler_params=pltpu.CompilerParams(
            dimension_semantics=("parallel", "parallel"),
            vmem_limit_bytes=vmem_limit,
        ),
    )(wy, wxt, image)

    if new_w_pad != new_w:
        out = out[:, :, :new_w]
    return out


def scale_bboxes(bboxes: jax.Array, sx: float, sy: float) -> jax.Array:
    """bboxes[:, [0, 2]] *= sx ; bboxes[:, [1, 3]] *= sy (out-of-place).

    Plain JAX: an (M, 4) Pallas call pads to an (8, 128) tile with masked stores
    and is dominated by launch/DMA overhead — removed per perf review."""
    scale = jnp.asarray([sx, sy, sx, sy], dtype=jnp.float32)
    return (bboxes * scale).astype(bboxes.dtype)


class Resize:
    """Mirror of the PyTorch module: resizes the CHW image with bilinear
    interpolation, rescales bboxes accordingly, passes labels through."""

    def __init__(self, size):
        self.size = tuple(int(s) for s in size)  # (new_h, new_w)

    def __call__(self, data: tuple):
        image, bboxes, labels = data
        _, h, w = image.shape
        new_h, new_w = self.size
        image = resize_bilinear(image, new_h, new_w)
        bboxes = scale_bboxes(bboxes, new_w / w, new_h / h)
        return (image, bboxes, labels)


if __name__ == "__main__":
    key = jax.random.PRNGKey(0)
    k_img, k_box, k_lab = jax.random.split(key, 3)

    # CHW image (spec indexes image.shape[1:] for h, w), small demo shapes.
    C, H, W = 3, 16, 16
    NEW_H, NEW_W = 32, 24
    image = jax.random.uniform(k_img, (C, H, W), dtype=jnp.float32)
    bboxes = jax.random.uniform(k_box, (8, 4), dtype=jnp.float32) * float(W)
    labels = jax.random.randint(k_lab, (8,), 0, 10, dtype=jnp.int32)

    resize = Resize([NEW_H, NEW_W])
    out_image, out_bboxes, out_labels = resize((image, bboxes, labels))
    jax.block_until_ready(out_image)
    jax.block_until_ready(out_bboxes)

    # Reference check (plain JAX, same bilinear weight matrices).
    wy = _bilinear_weight_matrix(H, NEW_H)
    wxt = _bilinear_weight_matrix(W, NEW_W).T
    ref_img = jnp.einsum("yh,chw,wx->cyx", wy, image.astype(jnp.float32), wxt)
    scale = jnp.asarray([NEW_W / W, NEW_H / H, NEW_W / W, NEW_H / H], jnp.float32)
    ref_boxes = bboxes * scale[None, :]

    assert out_image.shape == (C, NEW_H, NEW_W)
    assert jnp.allclose(out_image, ref_img.astype(image.dtype), atol=1e-4, rtol=1e-4)
    assert jnp.allclose(out_bboxes, ref_boxes, atol=1e-5, rtol=1e-5)
    assert jnp.array_equal(out_labels, labels)

    print("KERNEL_OK")
</pallas_src>

<mosaic_0001>
module attributes {stable_mosaic.version = 11 : i64} {
  func.func @_resize_kernel(%arg0: i32, %arg1: i32, %arg2: memref<16x16xf32, #tpu.memory_space<vmem>>, %arg3: memref<16x128xf32, #tpu.memory_space<vmem>>, %arg4: memref<3x16x16xf32, #tpu.memory_space<vmem>>, %arg5: memref<3x16x128xf32, #tpu.memory_space<vmem>>) attributes {dimension_semantics = [#tpu.dimension_semantics<parallel>, #tpu.dimension_semantics<parallel>], iteration_bounds = array<i64: 1, 2>, scalar_prefetch = 0 : i64, scratch_operands = 0 : i64, tpu.core_type = #tpu.core_type<tc>, window_params = [{transform_indices = @transform_0, window_bounds = array<i64: 16, 16>}, {pipeline_mode = #tpu.pipeline_mode<synchronous>, transform_indices = @transform_1, window_bounds = array<i64: 16, 128>}, {transform_indices = @transform_2, window_bounds = array<i64: 3, 16, 16>}, {transform_indices = @transform_3, window_bounds = array<i64: 3, 16, 128>}]} {
    %c0 = arith.constant 0 : index
    %c0_0 = arith.constant 0 : index
    %0 = vector.load %arg3[%c0, %c0_0] : memref<16x128xf32, #tpu.memory_space<vmem>>, vector<16x128xf32>
    %c0_1 = arith.constant 0 : index
    %c0_2 = arith.constant 0 : index
    %1 = vector.load %arg2[%c0_1, %c0_2] : memref<16x16xf32, #tpu.memory_space<vmem>>, vector<16x16xf32>
    %c0_3 = arith.constant 0 : index
    %c0_4 = arith.constant 0 : index
    %c0_5 = arith.constant 0 : index
    %2 = vector.load %arg4[%c0_3, %c0_4, %c0_5] : memref<3x16x16xf32, #tpu.memory_space<vmem>>, vector<3x16x16xf32>
    %3 = vector.shape_cast %2 : vector<3x16x16xf32> to vector<48x16xf32>
    %cst = arith.constant dense<0.000000e+00> : vector<48x128xf32>
    %4 = tpu.matmul %3, %0, %cst {dimension_numbers = #tpu.dot_dimension_numbers<[1], [0], [0], [1], [0, 0, 1, 1], [], []>} : vector<48x16xf32>, vector<16x128xf32>, vector<48x128xf32> -> vector<48x128xf32>
    %5 = vector.shape_cast %4 : vector<48x128xf32> to vector<3x16x128xf32>
    %6 = vector.extract_strided_slice %5 {offsets = [0, 0, 0], sizes = [1, 16, 128], strides = [1, 1, 1]} : vector<3x16x128xf32> to vector<1x16x128xf32>
    %7 = vector.shape_cast %6 : vector<1x16x128xf32> to vector<16x128xf32>
    %cst_6 = arith.constant dense<0.000000e+00> : vector<16x128xf32>
    %8 = tpu.matmul %1, %7, %cst_6 {dimension_numbers = #tpu.dot_dimension_numbers<[1], [0], [0], [1], [0, 0, 1, 1], [], []>} : vector<16x16xf32>, vector<16x128xf32>, vector<16x128xf32> -> vector<16x128xf32>
    %c0_7 = arith.constant 0 : index
    %c0_8 = arith.constant 0 : index
    %c0_9 = arith.constant 0 : index
    %9 = vector.load %arg5[%c0_7, %c0_8, %c0_9] : memref<3x16x128xf32, #tpu.memory_space<vmem>>, vector<1x16x128xf32>
    %10 = vector.shape_cast %9 : vector<1x16x128xf32> to vector<16x128xf32>
    %11 = vector.shape_cast %8 : vector<16x128xf32> to vector<1x16x128xf32>
    tpu.vector_store %arg5[%c0_7, %c0_8, %c0_9], %11 {strides = array<i32>} : memref<3x16x128xf32, #tpu.memory_space<vmem>>, vector<1x16x128xf32>,
    %12 = vector.extract_strided_slice %5 {offsets = [1, 0, 0], sizes = [1, 16, 128], strides = [1, 1, 1]} : vector<3x16x128xf32> to vector<1x16x128xf32>
    %13 = vector.shape_cast %12 : vector<1x16x128xf32> to vector<16x128xf32>
    %cst_10 = arith.constant dense<0.000000e+00> : vector<16x128xf32>
    %14 = tpu.matmul %1, %13, %cst_10 {dimension_numbers = #tpu.dot_dimension_numbers<[1], [0], [0], [1], [0, 0, 1, 1], [], []>} : vector<16x16xf32>, vector<16x128xf32>, vector<16x128xf32> -> vector<16x128xf32>
    %c1 = arith.constant 1 : index
    %c0_11 = arith.constant 0 : index
    %c0_12 = arith.constant 0 : index
    %15 = vector.load %arg5[%c1, %c0_11, %c0_12] : memref<3x16x128xf32, #tpu.memory_space<vmem>>, vector<1x16x128xf32>
    %16 = vector.shape_cast %15 : vector<1x16x128xf32> to vector<16x128xf32>
    %17 = vector.shape_cast %14 : vector<16x128xf32> to vector<1x16x128xf32>
    tpu.vector_store %arg5[%c1, %c0_11, %c0_12], %17 {strides = array<i32>} : memref<3x16x128xf32, #tpu.memory_space<vmem>>, vector<1x16x128xf32>,
    %18 = vector.extract_strided_slice %5 {offsets = [2, 0, 0], sizes = [1, 16, 128], strides = [1, 1, 1]} : vector<3x16x128xf32> to vector<1x16x128xf32>
    %19 = vector.shape_cast %18 : vector<1x16x128xf32> to vector<16x128xf32>
    %cst_13 = arith.constant dense<0.000000e+00> : vector<16x128xf32>
    %20 = tpu.matmul %1, %19, %cst_13 {dimension_numbers = #tpu.dot_dimension_numbers<[1], [0], [0], [1], [0, 0, 1, 1], [], []>} : vector<16x16xf32>, vector<16x128xf32>, vector<16x128xf32> -> vector<16x128xf32>
    %c2 = arith.constant 2 : index
    %c0_14 = arith.constant 0 : index
    %c0_15 = arith.constant 0 : index
    %21 = vector.load %arg5[%c2, %c0_14, %c0_15] : memref<3x16x128xf32, #tpu.memory_space<vmem>>, vector<1x16x128xf32>
    %22 = vector.shape_cast %21 : vector<1x16x128xf32> to vector<16x128xf32>
    %23 = vector.shape_cast %20 : vector<16x128xf32> to vector<1x16x128xf32>
    tpu.vector_store %arg5[%c2, %c0_14, %c0_15], %23 {strides = array<i32>} : memref<3x16x128xf32, #tpu.memory_space<vmem>>, vector<1x16x128xf32>,
    return
  }
  func.func @transform_0(%arg0: i32, %arg1: i32) -> (i32, i32) {
    %c0_i32 = arith.constant 0 : i32
    %c0_i32_0 = arith.constant 0 : i32
    return %arg1, %c0_i32 : i32, i32
  }
  func.func @transform_1(%arg0: i32, %arg1: i32) -> (i32, i32) {
    %c0_i32 = arith.constant 0 : i32
    %c0_i32_0 = arith.constant 0 : i32
    %c0_i32_1 = arith.constant 0 : i32
    return %c0_i32, %c0_i32_0 : i32, i32
  }
  func.func @transform_2(%arg0: i32, %arg1: i32) -> (i32, i32, i32) {
    %c0_i32 = arith.constant 0 : i32
    %c0_i32_0 = arith.constant 0 : i32
    %c0_i32_1 = arith.constant 0 : i32
    return %arg0, %c0_i32, %c0_i32_0 : i32, i32, i32
  }
  func.func @transform_3(%arg0: i32, %arg1: i32) -> (i32, i32, i32) {
    %c0_i32 = arith.constant 0 : i32
    %c0_i32_0 = arith.constant 0 : i32
    return %arg0, %arg1, %c0_i32 : i32, i32, i32
  }
}

</mosaic_0001>

<bundles_post_ra>
// kernel: tpu_custom_call.1
= control target key start
LH: loop header
LB: loop body
LE: loop exit
PB: predicated region body
PF: predicated region fallthrough
CT: control target
= control target key end

     0   :  { %8 = vsyncpa [#allocation3], 0  ;;  %s1201_s0 = inlined_call_operand.vmem [shape: f32[32,16], index: 0, kind: input, shape index: {}]   ;;  %s1202_s1 = inlined_call_operand.hbm [shape: f32[16,128], index: 1, kind: input, shape index: {}]   ;;  %s1203_s2 = inlined_call_operand.vmem [shape: f32[3,16,16], index: 2, kind: input, shape index: {}]   ;;  %s1204_s3 = inlined_call_operand.hbm [shape: f32[3,32,128], index: 3, kind: output, shape index: {}]  }
   0x1   :  { %9 = vsyncpa [#allocation4], 0 }
   0x2   :  { %11 = vsyncpa [#allocation4 + $0x1], 0  ;;  %s1033_s12 = smov 0   ;;  %s1035_s13 = smov 0  }
   0x3   :  { %s1037_s14 = smov 0   ;;  %s1039_s15 = smov 0  }
   0x4   :  { %s1041_s16 = smov 0   ;;  %s1043_s17 = smov 0  }
   0x5 LB: > { %s736_s18 = sadd.s32 4294967295, %s1001_s17   ;;  %s737_s19 = sadd.s32 4294967294, %s1001_s17   ;;  %s1001_s17 = sphi %s1043_s17, %s17_s17   ;;  %s997_s16 = sphi %s1041_s16, %s1222_s16   ;;  %s993_s15 = sphi %s1039_s15, %s1221_s15   ;;  %s989_s14 = sphi %s1037_s14, %s1220_s14   ;;  %s985_s13 = sphi %s1035_s13, %s1219_s13   ;;  %s981_s12 = sphi %s1033_s12, %s1218_s12  }
   0x6   : > { %s26_s20 = sadd.s32 1, %s997_s16  ;;  %s111_s21 = sadd.s32 1, %s989_s14 }
   0x7   : > { %p27_p0 = scmp.ge.s32.totalorder %s26_s20, 2  ;;  %p121_p1 = scmp.ne.s32.totalorder %s989_s14, %s985_s13 }
   0x8   : > { %p122_p2 = scmp.eq.s32.totalorder %s736_s18, 1  ;;  %p127_p3 = scmp.ne.s32.totalorder %s985_s13, %s981_s12 }
   0x9   : > { %s1224_s20 = smov (%p27_p0, %s26_s20), 0  ;;  %p128_p5 = scmp.eq.s32.totalorder %s737_s19, 1 }
   0xa   : > { %p1073_p4 = por %p122_p2, %p121_p1  ;;  %s107_s23 = ssub.s32 %s997_s16, %s1224_s20 }
   0xb   : > { %p738_p6 = scmp.ge.s32.totalorder %s1001_s17, 1  ;;  %p109_p7 = scmp.eq.s32.totalorder %s107_s23, 0 }
   0xc   : > { %s1209_s22 = scalar_select %p1073_p4, 1, 0 }
   0xd   : > { %p1080_p8 = por %p128_p5, %p127_p3  ;;  %p135_p9 = scmp.lt.s32.totalorder %s1001_s17, 3 }
   0xe   : > { %s1086_s25 = scalar_select %p109_p7, %s989_s14, %s111_s21  }
   0xf   : > { %s1210_s24 = scalar_select %p1080_p8, 1, 0 }
  0x10   : > { %p1088_p10 = pnand %p738_p6, %p135_p9  ;;  %p1092_p11 = scmp.eq.s32.totalorder %s736_s18, 0 }
  0x11   : > { %s1003_s28 = smov [#allocation2]   ;;  %s919_s6 = scalar_lea.hbm %s1202_s1, 256 }
  0x12   : > { %s1211_s26 = scalar_select %p1088_p10, 1, 0 }
  0x13   : > { %s1212_s27 = scalar_select %p1092_p11, 1, 0 }
  0x14   : > { %p850_p12 = pneg %p1088_p10  ;;  %s147_s29 = sshll.u32 %s1003_s28, 4  ;;  %s148_s29 = int_to_ptr.vmem [resolvable:$true] %s147_s29 }
  0x15   : > { %p920_p0 = scmp.ne.s32.totalorder %s1202_s1, %s919_s6  ;;  %p926_p5 = scmp.lt.u32.totalorder %s919_s6, %s1202_s1 }
  0x16   : > { %p1100_p13 = pnand %p1092_p11, %p850_p12 }
  0x18   : > { %p921_p1 = pneg %p1100_p13 }
  0x1a   : > { %p922_p2 = pnand %p921_p1, %p920_p0 }
  0x1c   : > { %p923_p3 = pneg %p922_p2 }
  0x1e   : > { %p928_p6 = pnand %p926_p5, %p923_p3 }
  0x20   : > { %931 = shalt.err (!%p928_p6)
}
  0x21   : > { %s932_s11 = scalar_lea.vmem %s148_s29, 256  ;;  %p940_p8 = scmp.lt.s32.totalorder %s148_s29, %s148_s29 }
  0x22   : > { %p933_p7 = scmp.ne.s32.totalorder %s148_s29, %s932_s11  ;;  %p941_p4 = scmp.lt.s32.totalorder %s932_s11, %s932_s11 }
  0x24   : > { %p935_p9 = pnand %p933_p7, %p921_p1  ;;  %p942_p11 = por %p941_p4, %p940_p8 }
  0x26   : > { %p936_p12 = pneg %p935_p9 }
  0x28   : > { %p943_p10 = pnand %p942_p11, %p936_p12 }
  0x2a   : > { %946 = shalt.err (!%p943_p10)
}
  0x2b   : > { %s1004_s18 = smov 128   ;;  %s1005_s19 = smov 8  }
  0x2c   : > { %853 = dma.hbm_to_vmem [thread:$0]  (!%p1100_p13), %s1202_s1, 256, %s148_s29, [#allocation3], %s1004_s18, %s1004_s18, %s1005_s19  }
  0x2d   : > { %p1214_p0 = scmp.ne.s32.totalorder %s1211_s26, 0 }
  0x2e   : > { %p1215_p2 = scmp.ne.s32.totalorder (!%p1214_p0), %s1212_s27, 0 }
  0x2f   : > { %182 = sbr.rel (%p1214_p0) target bundleno = 514 (0x202), region = 32 }
  0x36   : > { %972 = dma.done.wait (%p1215_p2), [#allocation3], 256  }
  0x37   : > { %974 = vsyncadd (%p1215_p2), [#allocation3], 4294967040  ;;  %vm237_vm0 = vcmask 130048   ;;  %v227_v0 = vld [vmem:[#allocation2] sm:$0xff]  ;;  %v228_v1 = vld [vmem:[#allocation2 + $0x8] sm:$0xff]  ;;  %s744_s11 = sshll.u32 %s993_s15, 1 }
  0x38   : > { %v231_v2 = vld [vmem:[%s1203_s2] sm:$0xff]  ;;  %v821_v3 = vpack.c.bf16 %v228_v1, %v227_v0  ;;  %v232_v4 = vld [vmem:[%s1203_s2 + $0x8] sm:$0xff]  ;;  %v233_v5 = vld [vmem:[%s1203_s2 + $0x10] sm:$0xff]  ;;  %p213_p4 = scmp.lt.s32.totalorder %s744_s11, 3  ;;  %s209_s28 = sand.u32 1, %s985_s13  }
  0x39   : > { %791 = vmatprep.mubr.msk.f32.mxu0 %vm237_vm0, %v231_v2  ;;  %v234_v6 = vld [vmem:[%s1203_s2 + $0x18] sm:$0xff]  ;;  %v235_v7 = vld [vmem:[%s1203_s2 + $0x20] sm:$0xff]  ;;  %v236_v8 = vld [vmem:[%s1203_s2 + $0x28] sm:$0xff]  ;;  %s837_s4 = smul.u32 48, %s209_s28  ;;  %s591_s29 = scalar_lea.sflag [#allocation4], %s209_s28 }
  0x3a   : > { %822 = vmatprep.subr.bf16.mxu0 %v821_v3  ;;  %s1226_s11 = smov (!%p213_p4, %s744_s11), 3 }
  0x3b   : > { %824 = vmatpush3.bf16.msra.mxu0 %v821_v3  ;;  %s745_s18 = sshll.u32 %s1226_s11, 3  ;;  %s211_s26 = scalar_lea.vmem [#allocation5], %s837_s4 }
  0x3c   : > { %s216_s23 = scalar_lea.vmem %s1201_s0, %s745_s18 }
  0x3d   : > { %v229_v9 = vld [vmem:[%s216_s23] sm:$0xff]  ;;  %v230_v15 = vld [vmem:[%s216_s23 + $0x8] sm:$0xff] }
  0x3e   : > { %792 = vmatmul.mubr.msk.f32.vlgmr.msra.gmra.mrb[0].mxu0 %vm237_vm0, %v232_v4  ;;  %804 = vmatprep.mubr.msk.f32.mxu1 %vm237_vm0, %v229_v9 }
  0x3f   : > { %794 = vmatprep.mubr.msk.f32.mxu0 %vm237_vm0, %v233_v5 }
  0x42   : > { %795 = vmatmul.mubr.msk.f32.gmra.mrb[2].mxu0 %vm237_vm0, %v234_v6 }
  0x43   : > { %797 = vmatprep.mubr.msk.f32.mxu0 %vm237_vm0, %v235_v7 }
  0x46   : > { %798 = vmatmul.mubr.msk.f32.gmra.mrb[4].mxu0 %vm237_vm0, %v236_v8 }
 0x111   : > { %v793_v10 = vpop.f32.mrb[0].mxu0 }
 0x112   : > { %v322_v11 = vpop.f32.mrb[1].mxu0 }
 0x113   : > { %v825_v12 = vpack.c.bf16 %v793_v10, %v322_v11 }
 0x115   : > { %v796_v13 = vpop.f32.mrb[2].mxu0  ;;  %826 = vmatprep.subr.bf16.mxu1 %v825_v12 }
 0x116   : > { %v332_v14 = vpop.f32.mrb[3].mxu0  ;;  %828 = vmatpush3.bf16.msra.mxu1 %v825_v12 }
 0x117   : > { %v829_v16 = vpack.c.bf16 %v796_v13, %v332_v14 }
 0x119   : > { %v799_v17 = vpop.f32.mrb[4].mxu0  ;;  %805 = vmatmul.mubr.msk.f32.vlgmr.msra.gmra.mrb[0].mxu1 %vm237_vm0, %v230_v15  ;;  %830 = vmatprep.subr.bf16.mxu1 %v829_v16 }
 0x11a   : > { %v342_v18 = vpop.f32.mrb[5].mxu0  ;;  %832 = vmatpush3.bf16.msra.mxu1 %v829_v16  ;;  %811 = vmatprep.mubr.msk.f32.mxu1 %vm237_vm0, %v229_v9 }
 0x11b   : > { %v833_v19 = vpack.c.bf16 %v799_v17, %v342_v18 }
 0x11d   : > { %812 = vmatmul.mubr.msk.f32.vlgmr.msra.gmra.mrb[2].mxu1 %vm237_vm0, %v230_v15  ;;  %834 = vmatprep.subr.bf16.mxu1 %v833_v19 }
 0x11e   : > { %836 = vmatpush3.bf16.msra.mxu1 %v833_v19  ;;  %818 = vmatprep.mubr.msk.f32.mxu1 %vm237_vm0, %v229_v9 }
 0x121   : > { %819 = vmatmul.mubr.msk.f32.vlgmr.msra.gmra.mrb[4].mxu1 %vm237_vm0, %v230_v15 }
 0x1ec   : > { %v806_v20 = vpop.f32.mrb[0].mxu1 }
 0x1ed   : > { %433 = vst [vmem:[%s211_s26 + $0x8] sm:$0xff] %v806_v20  ;;  %v423_v21 = vpop.f32.mrb[1].mxu1 }
 0x1ee   : > { %432 = vst [vmem:[%s211_s26] sm:$0xff] %v423_v21 }
 0x1f0   : > { %v813_v22 = vpop.f32.mrb[2].mxu1 }
 0x1f1   : > { %757 = vst [vmem:[%s211_s26 + $0x18] sm:$0xff] %v813_v22  ;;  %v500_v23 = vpop.f32.mrb[3].mxu1 }
 0x1f2   : > { %756 = vst [vmem:[%s211_s26 + $0x10] sm:$0xff] %v500_v23 }
 0x1f4   : > { %v820_v24 = vpop.f32.mrb[4].mxu1 }
 0x1f5   : > { %761 = vst [vmem:[%s211_s26 + $0x28] sm:$0xff] %v820_v24  ;;  %v578_v25 = vpop.f32.mrb[5].mxu1 }
 0x1f6   : > { %760 = vst [vmem:[%s211_s26 + $0x20] sm:$0xff] %v578_v25 }
 0x1f7   : > { %s766_s30 = sshll.u32 %s993_s15, 8  ;;  %s623_s27 = sshll.u32 %s211_s26, 4  ;;  %s624_s27 = int_to_ptr.vmem [resolvable:$true] %s623_s27 }
 0x1f8   : > { %s606_s7 = scalar_lea.hbm %s1204_s3, %s766_s30  ;;  %s1006_s8 = smov 256  }
 0x1f9   : > { %p1216_p8 = scmp.ne.s32.totalorder %s1209_s22, 0  ;;  %s1007_s9 = smov 512  }
 0x1fa   : > { %s1008_s10 = smov 2   ;;  %s1009_s11 = smov 128  }
 0x1fb   : > { %842 = sst [smem:[#allocation7]] (%p1216_p8), %s1006_s8  ;;  %s1010_s15 = smov 8  }
 0x1fc   : > { %843 = sst [smem:[#allocation7 + $0x1]] (%p1216_p8), %s1007_s9  ;;  %s1011_s18 = smov [#allocation6]  }
 0x1fd   : > { %844 = sst [smem:[#allocation7 + $0x2]] (%p1216_p8), %s1008_s10  ;;  %s1012_s19 = smov 0  }
 0x1fe   : > { %845 = sst [smem:[#allocation7 + $0x3]] (%p1216_p8), %s1009_s11 }
 0x1ff   : > { %846 = sst [smem:[#allocation7 + $0x4]] (%p1216_p8), %s1009_s11 }
 0x200   : > { %847 = sst [smem:[#allocation7 + $0x5]] (%p1216_p8), %s1010_s15 }
 0x201   : > { %848 = dma.general (%p1216_p8), %s624_s27, 768, %s606_s7, %s591_s29, %s1011_s18, [#allocation7], %s1012_s19, 0  }
 0x202 PF: > { %p860_p10 = scmp.ge.s32.totalorder %s1001_s17, 2  ;;  %s651_s21 = sand.u32 1, %s981_s12  }
 0x203   : > { %p1217_p11 = scmp.ne.s32.totalorder %s1210_s24, 0  ;;  %s652_s23 = scalar_lea.sflag [#allocation4], %s651_s21 }
 0x205   : > { %p855_p13 = pnand %p860_p10, %p1217_p11 }
 0x207   : > { %976 = dma.done.wait (!%p855_p13), %s652_s23, 768  }
 0x208   : > { %978 = vsyncadd (!%p855_p13), %s652_s23, 4294966528  ;;  %s17_s17 = sadd.s32 1, %s1001_s17   ;;  %s1218_s12 = smov %s985_s13 }
 0x209   : > { %p14_p1 = scmp.ge.s32.totalorder %s17_s17, 4   ;;  %s1219_s13 = smov %s989_s14 }
 0x20a   : > { %s1220_s14 = smov %s1086_s25  ;;  %s1221_s15 = smov %s997_s16 }
 0x20b   : > { %s1222_s16 = smov %s1224_s20  ;;  %16 = sbr.rel (!%p14_p1) target bundleno = 5 (0x5), region = 82 }
 0x212   :  { %657 = vsyncpa [#allocation3], 1 }
 0x213   :  { %659 = vsyncpa [#allocation3 + $0x1], 1 }
 0x214   :  { %660 = vsyncpa [#allocation4], 1 }
 0x215   :  { %662 = vsyncpa [#allocation4 + $0x1], 1 }

</bundles_post_ra>
